<compile_context>
chip_gen: v6e
topology: v6e:2x2x1
jax: 0.10.0
libtpu: 0.0.40
codegen_flags: <defaults>
</compile_context>

<pallas_src>
import math

import jax
import jax.numpy as jnp
from jax.experimental import pallas as pl
from jax.experimental.pallas import tpu as pltpu


OUT_PAD = 128  # lane-dense logits width (classifier output padded to 128 lanes)


# ----------------------------- Pallas kernel --------------------------------
def fusion_kernel(img_ref, txt_ref,
                  wvp_ref, bvp_ref, wtp_ref, btp_ref,
                  wqkv_ref, bqkv_ref, wo_ref, bo_ref,
                  hmask_ref, hmaskT_ref,
                  w1_ref, b1_ref, w2_ref, b2_ref,
                  out_ref):
    f32, bf16 = jnp.float32, jnp.bfloat16
    H = wvp_ref.shape[1]          # hidden_dim
    TB = img_ref.shape[0]         # batch rows in this block

    # vision_proj / text_proj  (dropout_img / dropout_txt == identity in eval)
    img_p = jnp.dot(img_ref[...], wvp_ref[...], preferred_element_type=f32) + bvp_ref[...]
    txt_p = jnp.dot(txt_ref[...], wtp_ref[...], preferred_element_type=f32) + btp_ref[...]

    # Fused MHA in-projection: one (2*TB, H) x (H, 3H) MXU push.
    # The q-block of wqkv / bqkv is pre-scaled by 1/sqrt(head_dim) host-side.
    x2 = jnp.concatenate([img_p, txt_p], axis=0).astype(bf16)        # (2*TB, H)
    qkv = jnp.dot(x2, wqkv_ref[...], preferred_element_type=f32) + bqkv_ref[...]
    q  = qkv[:TB, 0:H]            # query from img_proj (already scaled)
    k0 = qkv[:TB, H:2 * H]        # key   position 0 (img_proj)
    v0 = qkv[:TB, 2 * H:3 * H]    # value position 0 (img_proj)
    k1 = qkv[TB:, H:2 * H]        # key   position 1 (txt_proj)
    v1 = qkv[TB:, 2 * H:3 * H]    # value position 1 (txt_proj)

    # Per-head scores via block-sum mask (no reshapes / transposes):
    # M is (H, num_heads) with ones on each head's feature block.
    M = hmask_ref[...]
    s0 = jnp.dot((q * k0).astype(bf16), M, preferred_element_type=f32)   # (TB, nh)
    s1 = jnp.dot((q * k1).astype(bf16), M, preferred_element_type=f32)   # (TB, nh)

    # 2-key softmax == sigmoid(s0 - s1); exact, single exp + approx reciprocal.
    a0 = pl.reciprocal(1.0 + jnp.exp(s1 - s0), approx=True)              # (TB, nh)
    a0f = jnp.dot(a0.astype(bf16), hmaskT_ref[...], preferred_element_type=f32)  # (TB, H)
    # a1f == 1 - a0f (each hmaskT column is one-hot), so mix values directly:
    attn = v1 + a0f * (v0 - v1)

    # MHA output projection
    o = jnp.dot(attn.astype(bf16), wo_ref[...], preferred_element_type=f32) + bo_ref[...]

    # classifier: Linear -> ReLU -> (Dropout = identity) -> Linear (lane-padded)
    h = jnp.dot(o.astype(bf16), w1_ref[...], preferred_element_type=f32) + b1_ref[...]
    h = jnp.maximum(h, 0.0)
    logits = jnp.dot(h.astype(bf16), w2_ref[...], preferred_element_type=f32) + b2_ref[...]
    out_ref[...] = logits.astype(out_ref.dtype)


# ------------------------- host-side parameter prep --------------------------
def prepare_params(raw, *, num_heads):
    """One-time weight transform: transpose to (in, out), fuse q/k/v, fold the
    1/sqrt(head_dim) scale into q, build head block-sum masks (and its
    transpose), pad classifier output to OUT_PAD lanes, cast matmul operands
    to bf16 (biases stay f32)."""
    f32, bf16 = jnp.float32, jnp.bfloat16
    H = raw["wq"].shape[0]
    dh = H // num_heads
    scale = 1.0 / math.sqrt(dh)

    t = lambda w: jnp.asarray(w, f32).T        # (out, in) -> (in, out)

    wqkv = jnp.concatenate([t(raw["wq"]) * scale, t(raw["wk"]), t(raw["wv"])], axis=1)
    bqkv = jnp.concatenate([raw["bq"] * scale, raw["bk"], raw["bv"]], axis=1)

    hmask = jnp.repeat(jnp.eye(num_heads, dtype=f32), dh, axis=0)       # (H, nh)

    n_cls = raw["w2"].shape[0]
    w2 = jnp.zeros((raw["w2"].shape[1], OUT_PAD), f32).at[:, :n_cls].set(t(raw["w2"]))
    b2 = jnp.zeros((1, OUT_PAD), f32).at[:, :n_cls].set(raw["b2"])

    params = {
        "wvp": t(raw["wvp"]).astype(bf16), "bvp": raw["bvp"].astype(f32),
        "wtp": t(raw["wtp"]).astype(bf16), "btp": raw["btp"].astype(f32),
        "wqkv": wqkv.astype(bf16), "bqkv": bqkv.astype(f32),
        "wo": t(raw["wo"]).astype(bf16), "bo": raw["bo"].astype(f32),
        "hmask": hmask.astype(bf16), "hmaskT": hmask.T.astype(bf16),
        "w1": t(raw["w1"]).astype(bf16), "b1": raw["b1"].astype(f32),
        "w2": w2.astype(bf16), "b2": b2,
    }
    return params, n_cls


# ------------------------------- wrapper --------------------------------------
def fusion_head(img_feats, txt_feats, params, *, num_classes, block_b=1024):
    """Batch-tiled Pallas call.  block_b ~1-2K is sized for v7x's 64 MiB VMEM;
    v5e/v6e can go larger."""
    B, DV = img_feats.shape
    DT = txt_feats.shape[1]

    tb = max(8, (min(block_b, B) // 8) * 8)          # row tile, multiple of 8
    b_pad = pl.cdiv(B, tb) * tb
    if b_pad != B:
        img_feats = jnp.pad(img_feats, ((0, b_pad - B), (0, 0)))
        txt_feats = jnp.pad(txt_feats, ((0, b_pad - B), (0, 0)))

    img_feats = img_feats.astype(jnp.bfloat16)
    txt_feats = txt_feats.astype(jnp.bfloat16)

    weights = (params["wvp"], params["bvp"], params["wtp"], params["btp"],
               params["wqkv"], params["bqkv"], params["wo"], params["bo"],
               params["hmask"], params["hmaskT"],
               params["w1"], params["b1"], params["w2"], params["b2"])

    row_spec = lambda d: pl.BlockSpec((tb, d), lambda i: (i, 0))
    full_spec = lambda a: pl.BlockSpec(a.shape, lambda i: (0, 0))   # VMEM-resident

    out = pl.pallas_call(
        fusion_kernel,
        grid=(b_pad // tb,),
        in_specs=[row_spec(DV), row_spec(DT)] + [full_spec(w) for w in weights],
        out_specs=pl.BlockSpec((tb, OUT_PAD), lambda i: (i, 0)),
        out_shape=jax.ShapeDtypeStruct((b_pad, OUT_PAD), jnp.float32),
        compiler_params=pltpu.CompilerParams(dimension_semantics=("parallel",)),
    )(img_feats, txt_feats, *weights)
    return out[:B, :num_classes]


# ------------------------- pure-JAX f32 reference -----------------------------
def fusion_head_ref(img_feats, txt_feats, p, *, num_heads):
    H = p["wq"].shape[0]
    d = H // num_heads
    img_p = img_feats @ p["wvp"].T + p["bvp"][0]
    txt_p = txt_feats @ p["wtp"].T + p["btp"][0]
    seq = jnp.stack([img_p, txt_p], axis=0)                     # (2, B, H)
    q = img_p @ p["wq"].T + p["bq"][0]
    k = seq @ p["wk"].T + p["bk"][0]
    v = seq @ p["wv"].T + p["bv"][0]
    B = q.shape[0]
    qh = q.reshape(B, num_heads, d)
    kh = k.reshape(2, B, num_heads, d)
    vh = v.reshape(2, B, num_heads, d)
    s = jnp.einsum("bhd,sbhd->bhs", qh, kh) / jnp.sqrt(jnp.float32(d))
    w = jax.nn.softmax(s, axis=-1)
    out = jnp.einsum("bhs,sbhd->bhd", w, vh).reshape(B, H)
    out = out @ p["wo"].T + p["bo"][0]
    h = jax.nn.relu(out @ p["w1"].T + p["b1"][0])
    return h @ p["w2"].T + p["b2"][0]


# ------------------------------- main ----------------------------------------
if __name__ == "__main__":
    # small, deterministic configuration
    B, S = 8, 10               # batch, text sequence length
    C, HW = 3, 16              # pixel_values: (B, 3, 16, 16) NCHW
    VOCAB = 64
    DV, DT = 48, 40            # stub backbone pooled-feature widths
    HIDDEN, NUM_HEADS = 32, 4  # hidden_dim, num_heads (head_dim = 8)

    key = jax.random.PRNGKey(0)
    ks = jax.random.split(key, 24)

    # --- synthetic "raw" inputs (same signature as the PyTorch forward) ------
    pixel_values = jax.random.normal(ks[0], (B, C, HW, HW), jnp.float32)
    input_ids = jax.random.randint(ks[1], (B, S), 0, VOCAB)
    attention_mask = (jax.random.uniform(ks[2], (B, S)) > 0.2).astype(jnp.float32)

    # TODO(synk): pretrained ViT / BERT backbones have no clean small-scale
    # Pallas equivalent; replaced by deterministic plain-JAX pooling stubs that
    # produce the pooled feature vectors the fusion head consumes.
    w_img_stub = 0.02 * jax.random.normal(ks[3], (C * HW * HW, DV), jnp.float32)
    tok_emb = 0.1 * jax.random.normal(ks[4], (VOCAB, DT), jnp.float32)

    img_feats = pixel_values.reshape(B, -1) @ w_img_stub                     # (B, DV)
    emb = tok_emb[input_ids]                                                 # (B, S, DT)
    msk = attention_mask[..., None]
    txt_feats = jnp.tanh((emb * msk).sum(1) / jnp.maximum(msk.sum(1), 1.0))  # (B, DT)

    # --- deterministic fusion-head parameters (PyTorch (out, in) layout) -----
    def lin(k, out_dim, in_dim, scale=0.1):
        return scale * jax.random.normal(k, (out_dim, in_dim), jnp.float32)

    def bias(k, dim, scale=0.1):
        return scale * jax.random.normal(k, (1, dim), jnp.float32)

    raw = {
        "wvp": lin(ks[5], HIDDEN, DV),  "bvp": bias(ks[6], HIDDEN),
        "wtp": lin(ks[7], HIDDEN, DT),  "btp": bias(ks[8], HIDDEN),
        "wq":  lin(ks[9], HIDDEN, HIDDEN),  "bq": bias(ks[10], HIDDEN),
        "wk":  lin(ks[11], HIDDEN, HIDDEN), "bk": bias(ks[12], HIDDEN),
        "wv":  lin(ks[13], HIDDEN, HIDDEN), "bv": bias(ks[14], HIDDEN),
        "wo":  lin(ks[15], HIDDEN, HIDDEN), "bo": bias(ks[16], HIDDEN),
        "w1":  lin(ks[17], HIDDEN // 2, HIDDEN), "b1": bias(ks[18], HIDDEN // 2),
        "w2":  lin(ks[19], 2, HIDDEN // 2),      "b2": bias(ks[20], 2),
    }

    params, n_cls = prepare_params(raw, num_heads=NUM_HEADS)
    logits = fusion_head(img_feats, txt_feats, params, num_classes=n_cls)
    jax.block_until_ready(logits)

    ref = fusion_head_ref(img_feats, txt_feats, raw, num_heads=NUM_HEADS)
    err = float(jnp.max(jnp.abs(logits - ref)))
    assert logits.shape == (B, 2), logits.shape
    assert err < 2e-2, f"max abs err {err}"   # bf16-operand / f32-accumulate tolerance

    print("KERNEL_OK")
</pallas_src>

<mosaic_0001>
module attributes {stable_mosaic.version = 11 : i64} {
  func.func @fusion_kernel(%arg0: i32, %arg1: memref<8x48xbf16, #tpu.memory_space<vmem>>, %arg2: memref<8x40xbf16, #tpu.memory_space<vmem>>, %arg3: memref<48x32xbf16, #tpu.memory_space<vmem>>, %arg4: memref<1x32xf32, #tpu.memory_space<vmem>>, %arg5: memref<40x32xbf16, #tpu.memory_space<vmem>>, %arg6: memref<1x32xf32, #tpu.memory_space<vmem>>, %arg7: memref<32x96xbf16, #tpu.memory_space<vmem>>, %arg8: memref<1x96xf32, #tpu.memory_space<vmem>>, %arg9: memref<32x32xbf16, #tpu.memory_space<vmem>>, %arg10: memref<1x32xf32, #tpu.memory_space<vmem>>, %arg11: memref<32x4xbf16, #tpu.memory_space<vmem>>, %arg12: memref<4x32xbf16, #tpu.memory_space<vmem>>, %arg13: memref<32x16xbf16, #tpu.memory_space<vmem>>, %arg14: memref<1x16xf32, #tpu.memory_space<vmem>>, %arg15: memref<16x128xbf16, #tpu.memory_space<vmem>>, %arg16: memref<1x128xf32, #tpu.memory_space<vmem>>, %arg17: memref<8x128xf32, #tpu.memory_space<vmem>>) attributes {dimension_semantics = [#tpu.dimension_semantics<parallel>], iteration_bounds = array<i64: 1>, scalar_prefetch = 0 : i64, scratch_operands = 0 : i64, tpu.core_type = #tpu.core_type<tc>, window_params = [{transform_indices = @transform_0, window_bounds = array<i64: 8, 48>}, {transform_indices = @transform_1, window_bounds = array<i64: 8, 40>}, {pipeline_mode = #tpu.pipeline_mode<synchronous>, transform_indices = @transform_2, window_bounds = array<i64: 48, 32>}, {pipeline_mode = #tpu.pipeline_mode<synchronous>, transform_indices = @transform_3, window_bounds = array<i64: 1, 32>}, {pipeline_mode = #tpu.pipeline_mode<synchronous>, transform_indices = @transform_4, window_bounds = array<i64: 40, 32>}, {pipeline_mode = #tpu.pipeline_mode<synchronous>, transform_indices = @transform_5, window_bounds = array<i64: 1, 32>}, {pipeline_mode = #tpu.pipeline_mode<synchronous>, transform_indices = @transform_6, window_bounds = array<i64: 32, 96>}, {pipeline_mode = #tpu.pipeline_mode<synchronous>, transform_indices = @transform_7, window_bounds = array<i64: 1, 96>}, {pipeline_mode = #tpu.pipeline_mode<synchronous>, transform_indices = @transform_8, window_bounds = array<i64: 32, 32>}, {pipeline_mode = #tpu.pipeline_mode<synchronous>, transform_indices = @transform_9, window_bounds = array<i64: 1, 32>}, {pipeline_mode = #tpu.pipeline_mode<synchronous>, transform_indices = @transform_10, window_bounds = array<i64: 32, 4>}, {pipeline_mode = #tpu.pipeline_mode<synchronous>, transform_indices = @transform_11, window_bounds = array<i64: 4, 32>}, {pipeline_mode = #tpu.pipeline_mode<synchronous>, transform_indices = @transform_12, window_bounds = array<i64: 32, 16>}, {pipeline_mode = #tpu.pipeline_mode<synchronous>, transform_indices = @transform_13, window_bounds = array<i64: 1, 16>}, {pipeline_mode = #tpu.pipeline_mode<synchronous>, transform_indices = @transform_14, window_bounds = array<i64: 16, 128>}, {pipeline_mode = #tpu.pipeline_mode<synchronous>, transform_indices = @transform_15, window_bounds = array<i64: 1, 128>}, {transform_indices = @transform_16, window_bounds = array<i64: 8, 128>}]} {
    %c0 = arith.constant 0 : index
    %c0_0 = arith.constant 0 : index
    %0 = vector.load %arg1[%c0, %c0_0] : memref<8x48xbf16, #tpu.memory_space<vmem>>, vector<8x48xbf16>
    %c0_1 = arith.constant 0 : index
    %c0_2 = arith.constant 0 : index
    %1 = vector.load %arg3[%c0_1, %c0_2] : memref<48x32xbf16, #tpu.memory_space<vmem>>, vector<48x32xbf16>
    %cst = arith.constant dense<0.000000e+00> : vector<8x32xf32>
    %2 = tpu.matmul %0, %1, %cst {dimension_numbers = #tpu.dot_dimension_numbers<[1], [0], [0], [1], [0, 0, 1, 1], [], []>} : vector<8x48xbf16>, vector<48x32xbf16>, vector<8x32xf32> -> vector<8x32xf32>
    %c0_3 = arith.constant 0 : index
    %c0_4 = arith.constant 0 : index
    %3 = vector.load %arg4[%c0_3, %c0_4] : memref<1x32xf32, #tpu.memory_space<vmem>>, vector<1x32xf32>
    %4 = vector.broadcast %3 : vector<1x32xf32> to vector<8x32xf32>
    %5 = arith.addf %2, %4 : vector<8x32xf32>
    %c0_5 = arith.constant 0 : index
    %c0_6 = arith.constant 0 : index
    %6 = vector.load %arg2[%c0_5, %c0_6] : memref<8x40xbf16, #tpu.memory_space<vmem>>, vector<8x40xbf16>
    %c0_7 = arith.constant 0 : index
    %c0_8 = arith.constant 0 : index
    %7 = vector.load %arg5[%c0_7, %c0_8] : memref<40x32xbf16, #tpu.memory_space<vmem>>, vector<40x32xbf16>
    %cst_9 = arith.constant dense<0.000000e+00> : vector<8x32xf32>
    %8 = tpu.matmul %6, %7, %cst_9 {dimension_numbers = #tpu.dot_dimension_numbers<[1], [0], [0], [1], [0, 0, 1, 1], [], []>} : vector<8x40xbf16>, vector<40x32xbf16>, vector<8x32xf32> -> vector<8x32xf32>
    %c0_10 = arith.constant 0 : index
    %c0_11 = arith.constant 0 : index
    %9 = vector.load %arg6[%c0_10, %c0_11] : memref<1x32xf32, #tpu.memory_space<vmem>>, vector<1x32xf32>
    %10 = vector.broadcast %9 : vector<1x32xf32> to vector<8x32xf32>
    %11 = arith.addf %8, %10 : vector<8x32xf32>
    %12 = tpu.concatenate %5, %11 in 0 : vector<8x32xf32>, vector<8x32xf32> -> vector<16x32xf32>
    %13 = arith.truncf %12 : vector<16x32xf32> to vector<16x32xbf16>
    %c0_12 = arith.constant 0 : index
    %c0_13 = arith.constant 0 : index
    %14 = vector.load %arg7[%c0_12, %c0_13] : memref<32x96xbf16, #tpu.memory_space<vmem>>, vector<32x96xbf16>
    %cst_14 = arith.constant dense<0.000000e+00> : vector<16x96xf32>
    %15 = tpu.matmul %13, %14, %cst_14 {dimension_numbers = #tpu.dot_dimension_numbers<[1], [0], [0], [1], [0, 0, 1, 1], [], []>} : vector<16x32xbf16>, vector<32x96xbf16>, vector<16x96xf32> -> vector<16x96xf32>
    %c0_15 = arith.constant 0 : index
    %c0_16 = arith.constant 0 : index
    %16 = vector.load %arg8[%c0_15, %c0_16] : memref<1x96xf32, #tpu.memory_space<vmem>>, vector<1x96xf32>
    %17 = vector.broadcast %16 : vector<1x96xf32> to vector<16x96xf32>
    %18 = arith.addf %15, %17 : vector<16x96xf32>
    %19 = vector.extract_strided_slice %18 {offsets = [0, 0], sizes = [8, 32], strides = [1, 1]} : vector<16x96xf32> to vector<8x32xf32>
    %20 = vector.extract_strided_slice %18 {offsets = [0, 32], sizes = [8, 32], strides = [1, 1]} : vector<16x96xf32> to vector<8x32xf32>
    %21 = vector.extract_strided_slice %18 {offsets = [0, 64], sizes = [8, 32], strides = [1, 1]} : vector<16x96xf32> to vector<8x32xf32>
    %22 = vector.extract_strided_slice %18 {offsets = [8, 32], sizes = [8, 32], strides = [1, 1]} : vector<16x96xf32> to vector<8x32xf32>
    %23 = vector.extract_strided_slice %18 {offsets = [8, 64], sizes = [8, 32], strides = [1, 1]} : vector<16x96xf32> to vector<8x32xf32>
    %c0_17 = arith.constant 0 : index
    %c0_18 = arith.constant 0 : index
    %24 = vector.load %arg11[%c0_17, %c0_18] : memref<32x4xbf16, #tpu.memory_space<vmem>>, vector<32x4xbf16>
    %25 = arith.mulf %19, %20 : vector<8x32xf32>
    %26 = arith.truncf %25 : vector<8x32xf32> to vector<8x32xbf16>
    %cst_19 = arith.constant dense<0.000000e+00> : vector<8x4xf32>
    %27 = tpu.matmul %26, %24, %cst_19 {dimension_numbers = #tpu.dot_dimension_numbers<[1], [0], [0], [1], [0, 0, 1, 1], [], []>} : vector<8x32xbf16>, vector<32x4xbf16>, vector<8x4xf32> -> vector<8x4xf32>
    %28 = arith.mulf %19, %22 : vector<8x32xf32>
    %29 = arith.truncf %28 : vector<8x32xf32> to vector<8x32xbf16>
    %cst_20 = arith.constant dense<0.000000e+00> : vector<8x4xf32>
    %30 = tpu.matmul %29, %24, %cst_20 {dimension_numbers = #tpu.dot_dimension_numbers<[1], [0], [0], [1], [0, 0, 1, 1], [], []>} : vector<8x32xbf16>, vector<32x4xbf16>, vector<8x4xf32> -> vector<8x4xf32>
    %31 = arith.subf %30, %27 : vector<8x4xf32>
    %32 = math.exp %31 : vector<8x4xf32>
    %cst_21 = arith.constant 1.000000e+00 : f32
    %33 = vector.broadcast %cst_21 : f32 to vector<8x4xf32>
    %34 = arith.addf %33, %32 : vector<8x4xf32>
    %35 = tpu.reciprocal %34 {approx = true} : vector<8x4xf32> -> vector<8x4xf32>
    %36 = arith.truncf %35 : vector<8x4xf32> to vector<8x4xbf16>
    %c0_22 = arith.constant 0 : index
    %c0_23 = arith.constant 0 : index
    %37 = vector.load %arg12[%c0_22, %c0_23] : memref<4x32xbf16, #tpu.memory_space<vmem>>, vector<4x32xbf16>
    %cst_24 = arith.constant dense<0.000000e+00> : vector<8x32xf32>
    %38 = tpu.matmul %36, %37, %cst_24 {dimension_numbers = #tpu.dot_dimension_numbers<[1], [0], [0], [1], [0, 0, 1, 1], [], []>} : vector<8x4xbf16>, vector<4x32xbf16>, vector<8x32xf32> -> vector<8x32xf32>
    %39 = arith.subf %21, %23 : vector<8x32xf32>
    %40 = arith.mulf %38, %39 : vector<8x32xf32>
    %41 = arith.addf %23, %40 : vector<8x32xf32>
    %42 = arith.truncf %41 : vector<8x32xf32> to vector<8x32xbf16>
    %c0_25 = arith.constant 0 : index
    %c0_26 = arith.constant 0 : index
    %43 = vector.load %arg9[%c0_25, %c0_26] : memref<32x32xbf16, #tpu.memory_space<vmem>>, vector<32x32xbf16>
    %cst_27 = arith.constant dense<0.000000e+00> : vector<8x32xf32>
    %44 = tpu.matmul %42, %43, %cst_27 {dimension_numbers = #tpu.dot_dimension_numbers<[1], [0], [0], [1], [0, 0, 1, 1], [], []>} : vector<8x32xbf16>, vector<32x32xbf16>, vector<8x32xf32> -> vector<8x32xf32>
    %c0_28 = arith.constant 0 : index
    %c0_29 = arith.constant 0 : index
    %45 = vector.load %arg10[%c0_28, %c0_29] : memref<1x32xf32, #tpu.memory_space<vmem>>, vector<1x32xf32>
    %46 = vector.broadcast %45 : vector<1x32xf32> to vector<8x32xf32>
    %47 = arith.addf %44, %46 : vector<8x32xf32>
    %48 = arith.truncf %47 : vector<8x32xf32> to vector<8x32xbf16>
    %c0_30 = arith.constant 0 : index
    %c0_31 = arith.constant 0 : index
    %49 = vector.load %arg13[%c0_30, %c0_31] : memref<32x16xbf16, #tpu.memory_space<vmem>>, vector<32x16xbf16>
    %cst_32 = arith.constant dense<0.000000e+00> : vector<8x16xf32>
    %50 = tpu.matmul %48, %49, %cst_32 {dimension_numbers = #tpu.dot_dimension_numbers<[1], [0], [0], [1], [0, 0, 1, 1], [], []>} : vector<8x32xbf16>, vector<32x16xbf16>, vector<8x16xf32> -> vector<8x16xf32>
    %c0_33 = arith.constant 0 : index
    %c0_34 = arith.constant 0 : index
    %51 = vector.load %arg14[%c0_33, %c0_34] : memref<1x16xf32, #tpu.memory_space<vmem>>, vector<1x16xf32>
    %52 = vector.broadcast %51 : vector<1x16xf32> to vector<8x16xf32>
    %53 = arith.addf %50, %52 : vector<8x16xf32>
    %cst_35 = arith.constant 0.000000e+00 : f32
    %54 = vector.broadcast %cst_35 : f32 to vector<8x16xf32>
    %55 = arith.maximumf %53, %54 : vector<8x16xf32>
    %56 = arith.truncf %55 : vector<8x16xf32> to vector<8x16xbf16>
    %c0_36 = arith.constant 0 : index
    %c0_37 = arith.constant 0 : index
    %57 = vector.load %arg15[%c0_36, %c0_37] : memref<16x128xbf16, #tpu.memory_space<vmem>>, vector<16x128xbf16>
    %cst_38 = arith.constant dense<0.000000e+00> : vector<8x128xf32>
    %58 = tpu.matmul %56, %57, %cst_38 {dimension_numbers = #tpu.dot_dimension_numbers<[1], [0], [0], [1], [0, 0, 1, 1], [], []>} : vector<8x16xbf16>, vector<16x128xbf16>, vector<8x128xf32> -> vector<8x128xf32>
    %c0_39 = arith.constant 0 : index
    %c0_40 = arith.constant 0 : index
    %59 = vector.load %arg16[%c0_39, %c0_40] : memref<1x128xf32, #tpu.memory_space<vmem>>, vector<1x128xf32>
    %60 = vector.broadcast %59 : vector<1x128xf32> to vector<8x128xf32>
    %61 = arith.addf %58, %60 : vector<8x128xf32>
    %c0_41 = arith.constant 0 : index
    %c0_42 = arith.constant 0 : index
    %62 = vector.load %arg17[%c0_41, %c0_42] : memref<8x128xf32, #tpu.memory_space<vmem>>, vector<8x128xf32>
    tpu.vector_store %arg17[%c0_41, %c0_42], %61 {strides = array<i32>} : memref<8x128xf32, #tpu.memory_space<vmem>>, vector<8x128xf32>,
    return
  }
  func.func @transform_0(%arg0: i32) -> (i32, i32) {
    %c0_i32 = arith.constant 0 : i32
    %c0_i32_0 = arith.constant 0 : i32
    return %arg0, %c0_i32 : i32, i32
  }
  func.func @transform_1(%arg0: i32) -> (i32, i32) {
    %c0_i32 = arith.constant 0 : i32
    %c0_i32_0 = arith.constant 0 : i32
    return %arg0, %c0_i32 : i32, i32
  }
  func.func @transform_2(%arg0: i32) -> (i32, i32) {
    %c0_i32 = arith.constant 0 : i32
    %c0_i32_0 = arith.constant 0 : i32
    %c0_i32_1 = arith.constant 0 : i32
    return %c0_i32, %c0_i32_0 : i32, i32
  }
  func.func @transform_3(%arg0: i32) -> (i32, i32) {
    %c0_i32 = arith.constant 0 : i32
    %c0_i32_0 = arith.constant 0 : i32
    %c0_i32_1 = arith.constant 0 : i32
    return %c0_i32, %c0_i32_0 : i32, i32
  }
  func.func @transform_4(%arg0: i32) -> (i32, i32) {
    %c0_i32 = arith.constant 0 : i32
    %c0_i32_0 = arith.constant 0 : i32
    %c0_i32_1 = arith.constant 0 : i32
    return %c0_i32, %c0_i32_0 : i32, i32
  }
  func.func @transform_5(%arg0: i32) -> (i32, i32) {
    %c0_i32 = arith.constant 0 : i32
    %c0_i32_0 = arith.constant 0 : i32
    %c0_i32_1 = arith.constant 0 : i32
    return %c0_i32, %c0_i32_0 : i32, i32
  }
  func.func @transform_6(%arg0: i32) -> (i32, i32) {
    %c0_i32 = arith.constant 0 : i32
    %c0_i32_0 = arith.constant 0 : i32
    %c0_i32_1 = arith.constant 0 : i32
    return %c0_i32, %c0_i32_0 : i32, i32
  }
  func.func @transform_7(%arg0: i32) -> (i32, i32) {
    %c0_i32 = arith.constant 0 : i32
    %c0_i32_0 = arith.constant 0 : i32
    %c0_i32_1 = arith.constant 0 : i32
    return %c0_i32, %c0_i32_0 : i32, i32
  }
  func.func @transform_8(%arg0: i32) -> (i32, i32) {
    %c0_i32 = arith.constant 0 : i32
    %c0_i32_0 = arith.constant 0 : i32
    %c0_i32_1 = arith.constant 0 : i32
    return %c0_i32, %c0_i32_0 : i32, i32
  }
  func.func @transform_9(%arg0: i32) -> (i32, i32) {
    %c0_i32 = arith.constant 0 : i32
    %c0_i32_0 = arith.constant 0 : i32
    %c0_i32_1 = arith.constant 0 : i32
    return %c0_i32, %c0_i32_0 : i32, i32
  }
  func.func @transform_10(%arg0: i32) -> (i32, i32) {
    %c0_i32 = arith.constant 0 : i32
    %c0_i32_0 = arith.constant 0 : i32
    %c0_i32_1 = arith.constant 0 : i32
    return %c0_i32, %c0_i32_0 : i32, i32
  }
  func.func @transform_11(%arg0: i32) -> (i32, i32) {
    %c0_i32 = arith.constant 0 : i32
    %c0_i32_0 = arith.constant 0 : i32
    %c0_i32_1 = arith.constant 0 : i32
    return %c0_i32, %c0_i32_0 : i32, i32
  }
  func.func @transform_12(%arg0: i32) -> (i32, i32) {
    %c0_i32 = arith.constant 0 : i32
    %c0_i32_0 = arith.constant 0 : i32
    %c0_i32_1 = arith.constant 0 : i32
    return %c0_i32, %c0_i32_0 : i32, i32
  }
  func.func @transform_13(%arg0: i32) -> (i32, i32) {
    %c0_i32 = arith.constant 0 : i32
    %c0_i32_0 = arith.constant 0 : i32
    %c0_i32_1 = arith.constant 0 : i32
    return %c0_i32, %c0_i32_0 : i32, i32
  }
  func.func @transform_14(%arg0: i32) -> (i32, i32) {
    %c0_i32 = arith.constant 0 : i32
    %c0_i32_0 = arith.constant 0 : i32
    %c0_i32_1 = arith.constant 0 : i32
    return %c0_i32, %c0_i32_0 : i32, i32
  }
  func.func @transform_15(%arg0: i32) -> (i32, i32) {
    %c0_i32 = arith.constant 0 : i32
    %c0_i32_0 = arith.constant 0 : i32
    %c0_i32_1 = arith.constant 0 : i32
    return %c0_i32, %c0_i32_0 : i32, i32
  }
  func.func @transform_16(%arg0: i32) -> (i32, i32) {
    %c0_i32 = arith.constant 0 : i32
    %c0_i32_0 = arith.constant 0 : i32
    return %arg0, %c0_i32 : i32, i32
  }
}

</mosaic_0001>

<bundles_post_ra>
// kernel: tpu_custom_call.1
= control target key start
LH: loop header
LB: loop body
LE: loop exit
PB: predicated region body
PF: predicated region fallthrough
CT: control target
= control target key end

     0   :  { %s1053_s0 = inlined_call_operand.vmem [shape: bf16[8,48], index: 0, kind: input, shape index: {}]   ;;  %s1054_s1 = inlined_call_operand.vmem [shape: bf16[8,40], index: 1, kind: input, shape index: {}]   ;;  %s1055_s2 = inlined_call_operand.vmem [shape: bf16[48,32], index: 2, kind: input, shape index: {}]   ;;  %s1056_s3 = inlined_call_operand.vmem [shape: f32[1,32], index: 3, kind: input, shape index: {}]   ;;  %s1057_s4 = inlined_call_operand.vmem [shape: bf16[40,32], index: 4, kind: input, shape index: {}]   ;;  %s1058_s5 = inlined_call_operand.vmem [shape: f32[1,32], index: 5, kind: input, shape index: {}]   ;;  %s1059_s6 = inlined_call_operand.vmem [shape: bf16[32,96], index: 6, kind: input, shape index: {}]   ;;  %s1060_s7 = inlined_call_operand.vmem [shape: f32[1,96], index: 7, kind: input, shape index: {}]   ;;  %s1061_s8 = inlined_call_operand.vmem [shape: bf16[32,32], index: 8, kind: input, shape index: {}]   ;;  %s1062_s9 = inlined_call_operand.vmem [shape: f32[1,32], index: 9, kind: input, shape index: {}]   ;;  %s1063_s10 = inlined_call_operand.vmem [shape: bf16[32,4], index: 10, kind: input, shape index: {}]   ;;  %s1064_s11 = inlined_call_operand.vmem [shape: bf16[4,32], index: 11, kind: input, shape index: {}]   ;;  %s1065_s12 = inlined_call_operand.vmem [shape: bf16[32,16], index: 12, kind: input, shape index: {}]   ;;  %s1066_s13 = inlined_call_operand.vmem [shape: f32[1,16], index: 13, kind: input, shape index: {}]   ;;  %s1067_s14 = inlined_call_operand.vmem [shape: bf16[16,128], index: 14, kind: input, shape index: {}]   ;;  %s1068_s15 = inlined_call_operand.vmem [shape: f32[1,128], index: 15, kind: input, shape index: {}]   ;;  %s1069_s16 = inlined_call_operand.hbm [shape: f32[8,128], index: 16, kind: output, shape index: {}]  }
   0x1   :  { %1070 = sst [smem:[#allocation5_spill]] %s1053_s0 }
   0x2   :  { %v803_v0 = vld [vmem:[%s1055_s2 + $0x10] sm:$0xff]   ;;  %v844_v1 = vmov 0.0   ;;  %vm163_vm0 = vcmask 1043456   ;;  %v805_v3 = vld [vmem:[%s1055_s2 + $0x8] sm:$0xff]   ;;  %vm845_vm1 = vmmov 0   ;;  %v807_v6 = vld [vmem:[%s1055_s2] sm:$0xff]  }
   0x3   :  { %726 = vmatprep.subr.bf16.mxu0 %v844_v1  ;;  %736 = vmatprep.subr.bf16.mxu1 %v844_v1  ;;  %v804_v2 = vld [vmem:[%s1057_s4 + $0x10] ss:$0 sps:$4 sm:$0xff]   ;;  %v806_v5 = vld [vmem:[%s1057_s4 + $0x8] sm:$0xff]   ;;  %v808_v7 = vld [vmem:[%s1057_s4] sm:$0xff]   ;;  %vm87_vm2 = vcmask 392192   ;;  %vm159_vm3 = vcmask 326656  }
   0x4   :  { %727 = vmatpush3.bf16.msra.mxu0 %v803_v0  ;;  %v165_v4 = vsel %vm163_vm0, %v804_v2, 0  ;;  %732 = vmatprep.mubr.msk.bf16.mxu0 %vm845_vm1, %v844_v1  ;;  %s1071_s20 = sld [smem:[#allocation5_spill]]  ;;  %v809_v9 = vld [vmem:[%s1059_s6 + $0x8] sm:$0xff]   ;;  %v131_v10 = vld [vmem:[%s1054_s1] sm:$0xf] }
   0x5   :  { %728 = vmatprep.subr.bf16.mxu0 %v844_v1  ;;  %737 = vmatpush3.bf16.msra.mxu1 %v165_v4 }
   0x6   :  { %738 = vmatprep.subr.bf16.mxu1 %v844_v1  ;;  %742 = vmatprep.mubr.msk.bf16.mxu1 %vm845_vm1, %v844_v1 }
   0x8   :  { %729 = vmatpush3.bf16.msra.mxu0 %v805_v3 }
   0x9   :  { %730 = vmatprep.subr.bf16.mxu0 %v844_v1  ;;  %739 = vmatpush3.bf16.msra.mxu1 %v806_v5 }
   0xa   :  { %v55_v8 = vld [vmem:[%s1071_s20] sm:$0xf]  ;;  %740 = vmatprep.subr.bf16.mxu1 %v844_v1 }
   0xc   :  { %731 = vmatpush3.bf16.msra.mxu0 %v807_v6 }
   0xd   :  { %746 = vmatprep.subr.bf16.mxu0 %v844_v1  ;;  %741 = vmatpush3.bf16.msra.mxu1 %v808_v7 }
   0xe   :  { %754 = vmatprep.subr.bf16.mxu1 %v844_v1 }
   0xf   :  { %733 = vmatmul.mubr.msk.bf16.vlgmr.msra.gmra.mxu0 %vm87_vm2, %v55_v8 }
  0x10   :  { %21 = vsyncpa [#allocation3], 0  ;;  %747 = vmatpush3.bf16.msra.mxu0 %v809_v9  ;;  %750 = vmatprep.mubr.msk.bf16.mxu0 %vm845_vm1, %v844_v1  ;;  %v810_v11 = vld [vmem:[%s1059_s6] sm:$0xff]   ;;  %vm231_vm4 = vcmask 261120   ;;  %v811_v25 = vld [vmem:[%s1063_s10 + $0x8] sm:$0xff]   ;;  %s846_s0 = smov 96  }
  0x11   :  { %743 = vmatmul.mubr.msk.bf16.vlgmr.msra.gmra.mxu1 %vm159_vm3, %v131_v10  ;;  %748 = vmatprep.subr.bf16.mxu0 %v844_v1  ;;  %v669_v12 = vld [vmem:[%s1056_s3] ss:$0 sm:$0xff]  ;;  %vm401_vm5 = vcmask 1041408   ;;  %vm397_vm6 = vcmask 31744   ;;  %v813_v57 = vld [vmem:[%s1061_s8 + $0x8] sm:$0xff]   ;;  %vm610_vm7 = vcmask 130048  }
  0x12   :  { %758 = vmatprep.mubr.msk.bf16.mxu1 %vm845_vm1, %v844_v1  ;;  %v674_v14 = vld [vmem:[%s1058_s5] ss:$0 sm:$0xff]  ;;  %755 = vmatpush3.bf16.msra.mxu1 %v811_v25  ;;  %v815_v2 = vld [vmem:[%s1065_s12 + $0x8] sm:$0xff]   ;;  %s848_s26 = smov [#allocation2]  }
  0x13   :  { %756 = vmatprep.subr.bf16.mxu1 %v844_v1  ;;  %v812_v26 = vld [vmem:[%s1063_s10] sm:$0xff]   ;;  %s847_s10 = smov 64   ;;  %s661_s27 = sshll.u32 %s848_s26, 4  ;;  %s662_s27 = int_to_ptr.vmem [resolvable:$true] %s661_s27 }
  0x14   :  { %749 = vmatpush3.bf16.msra.mxu0 %v810_v11  ;;  %v679_v27 = vld [vmem:[%s1060_s7] ss:$0 sm:$0xff]  ;;  %p827_p1 = scmp.lt.s32.totalorder %s662_s27, %s662_s27 }
  0x15   :  { %762 = vmatprep.subr.bf16.mxu0 %v844_v1  ;;  %v396_v41 = vld [vmem:[%s1064_s11] sm:$0x3] }
  0x16   :  { %757 = vmatpush3.bf16.msra.mxu1 %v812_v26  ;;  %v403_v42 = vsel %vm401_vm5, %v396_v41, 0  ;;  %v814_v58 = vld [vmem:[%s1061_s8] sm:$0xff]  }
  0x17   :  { %770 = vmatprep.subr.bf16.mxu1 %v844_v1  ;;  %v816_v7 = vld [vmem:[%s1065_s12] sm:$0xff]  }
  0x18   :  { %v817_v8 = vld [vmem:[%s1067_s14] sm:$0xff]  }
  0x19   :  { %v688_v9 = vld [vmem:[%s1062_s9] ss:$0 sm:$0xff] }
  0xcf   :  { %v125_v13 = vpop.f32.mrf.mxu0 }
  0xd0   :  { %v126_v15 = vadd.f32 %v669_v12, %v125_v13 }
  0xd1   :  { %v201_v16 = vpop.f32.mrf.mxu1  ;;  %v734_v17 = vpop.f32.mrf.mxu0 }
  0xd2   :  { %v202_v18 = vadd.f32 %v674_v14, %v201_v16 }
  0xd3   :  { %v744_v19 = vpop.f32.mrf.mxu1  ;;  %v128_v20 = vpop.f32.mrf.mxu0 }
  0xd4   :  { %v207_v21 = vpack.c.bf16 %v202_v18, %v126_v15  ;;  %v692_v15 = vld [vmem:[%s1066_s13] ss:$0 sm:$0xff]  ;;  %s822_s13 = scalar_lea.vmem %s662_s27, 128 }
  0xd5   :  { %v204_v22 = vpop.f32.mrf.mxu1  ;;  %v735_v23 = vpop.f32.mrf.mxu0  ;;  %p823_p0 = scmp.ne.s32.totalorder %s662_s27, %s822_s13  ;;  %p828_p2 = scmp.lt.s32.totalorder %s822_s13, %s822_s13 }
  0xd6   :  { %751 = vmatmul.mubr.msk.bf16.vlgmr.msra.gmra.mxu0 %vm231_vm4, %v207_v21  ;;  %v696_v23 = vld [vmem:[%s1068_s15] ss:$0 sm:$0xff] }
  0xd7   :  { %v745_v24 = vpop.f32.mrf.mxu1  ;;  %766 = vmatprep.mubr.msk.bf16.mxu0 %vm845_vm1, %v844_v1  ;;  %763 = vmatpush3.bf16.msra.mxu0 %v811_v25  ;;  %p829_p3 = por %p828_p2, %p827_p1 }
  0xd8   :  { %764 = vmatprep.subr.bf16.mxu0 %v844_v1 }
  0xd9   :  { %p830_p4 = pnand %p829_p3, %p823_p0 }
  0xdb   :  { %765 = vmatpush3.bf16.msra.mxu0 %v812_v26 }
  0xdc   :  { %776 = vmatprep.subr.bf16.mxu0 %v844_v1 }
 0x196   :  { %v269_v28 = vpop.f32.mrf.mxu0 }
 0x197   :  { %v270_v29 = vadd.f32 %v679_v27, %v269_v28 }
 0x198   :  { %v752_v30 = vpop.f32.mrf.mxu0 }
 0x199   :  { %281 = vrot.lane.b32.xlu0 %v270_v29, %s846_s0 }
 0x19a   :  { %v272_v31 = vpop.f32.mrf.mxu0 }
 0x19b   :  { %v273_v32 = vadd.f32 %v679_v27, %v272_v31 }
 0x19c   :  { %v753_v33 = vpop.f32.mrf.mxu0 }
 0x19d   :  { %342 = vrot.lane.b32.xlu0 %v273_v32, %s846_s0  ;;  %v445_v34 = vsub.f32 %v270_v29, %v273_v32 }
 0x19f   :  { %447 = vrot.lane.b32.xlu1 %v445_v34, %s847_s10 }
 0x20b   :  { %v282_v35 = vpop.permute.xlu0 %281 }
 0x20c   :  { %v284_v36 = vmul.f32 %v282_v35, %v270_v29 }
 0x20e   :  { %v285_v37 = vpack.c.bf16 %v284_v36, %v284_v36 }
 0x20f   :  { %v343_v38 = vpop.permute.xlu0 %342 }
 0x210   :  { %v345_v39 = vmul.f32 %v343_v38, %v270_v29  ;;  %759 = vmatmul.mubr.msk.bf16.vlgmr.msra.gmra.mxu1 %vm231_vm4, %v285_v37 }
 0x211   :  { %772 = vmatprep.mubr.msk.bf16.mxu1 %vm845_vm1, %v844_v1  ;;  %771 = vmatpush3.bf16.msra.mxu1 %v403_v42  ;;  %v448_v59 = vpop.permute.xlu1 %447 }
 0x212   :  { %v346_v40 = vpack.c.bf16 %v345_v39, %v345_v39  ;;  %784 = vmatprep.subr.bf16.mxu1 %v844_v1 }
 0x214   :  { %767 = vmatmul.mubr.msk.bf16.vlgmr.msra.gmra.mxu0 %vm231_vm4, %v346_v40 }
 0x215   :  { %780 = vmatprep.mubr.msk.bf16.mxu0 %vm845_vm1, %v844_v1  ;;  %777 = vmatpush3.bf16.msra.mxu0 %v813_v57 }
 0x216   :  { %778 = vmatprep.subr.bf16.mxu0 %v844_v1 }
 0x219   :  { %779 = vmatpush3.bf16.msra.mxu0 %v814_v58 }
 0x21a   :  { %792 = vmatprep.subr.bf16.mxu0 %v844_v1 }
 0x2d0   :  { %v335_v43 = vpop.f32.mrf.mxu1 }
 0x2d2   :  { %v760_v44 = vpop.f32.mrf.mxu1 }
 0x2d4   :  { %v338_v45 = vpop.f32.mrf.mxu1  ;;  %v384_v46 = vpop.f32.mrf.mxu0 }
 0x2d5   :  { %v390_v47 = vsub.f32 %v384_v46, %v335_v43 }
 0x2d6   :  { %v761_v48 = vpop.f32.mrf.mxu1  ;;  %v768_v49 = vpop.f32.mrf.mxu0 }
 0x2d7   :  { %v391_v50 = vmul.f32 1.442695, %v390_v47 }
 0x2d8   :  { %v387_v51 = vpop.f32.mrf.mxu0 }
 0x2d9   :  { %818 = vpow2.f32 %v391_v50 }
 0x2da   :  { %v769_v52 = vpop.f32.mrf.mxu0 }
 0x2e6   :  { %v819_v53 = vpop.eup %818 }
 0x2e7   :  { %v393_v54 = vadd.f32 1.0, %v819_v53 }
 0x2e9   :  { %820 = vrcp.f32 %v393_v54 }
 0x2f6   :  { %v821_v55 = vpop.eup %820 }
 0x2f7   :  { %v395_v56 = vpack.c.bf16 %v821_v55, %v821_v55 }
 0x2f9   :  { %773 = vmatmul.mubr.msk.bf16.vlgmr.msra.gmra.mxu1 %vm397_vm6, %v395_v56 }
 0x2fa   :  { %788 = vmatprep.mubr.msk.bf16.mxu1 %vm845_vm1, %v844_v1  ;;  %785 = vmatpush3.bf16.msra.mxu1 %v815_v2 }
 0x2fb   :  { %786 = vmatprep.subr.bf16.mxu1 %v844_v1 }
 0x2fe   :  { %787 = vmatpush3.bf16.msra.mxu1 %v816_v7 }
 0x3b9   :  { %v439_v60 = vpop.f32.mrf.mxu1 }
 0x3ba   :  { %v450_v61 = vmul.f32 %v448_v59, %v439_v60 }
 0x3bb   :  { %v774_v62 = vpop.f32.mrf.mxu1 }
 0x3bc   :  { %452 = vrot.lane.b32.xlu1 %v450_v61, %s847_s10 }
 0x3bd   :  { %v442_v63 = vpop.f32.mrf.mxu1 }
 0x3bf   :  { %v775_v0 = vpop.f32.mrf.mxu1 }
 0x42e   :  { %v453_v3 = vpop.permute.xlu1 %452 }
 0x42f   :  { %v455_v4 = vadd.f32 %v453_v3, %v273_v32 }
 0x431   :  { %v456_v5 = vpack.c.bf16 %v455_v4, %v455_v4 }
 0x433   :  { %469 = vrot.lane.b32.xlu0 %v456_v5, %s847_s10 }
 0x4a5   :  { %v470_v6 = vpop.permute.xlu0 %469 }
 0x4a6   :  { %781 = vmatmul.mubr.msk.bf16.vlgmr.msra.gmra.mxu0 %vm231_vm4, %v470_v6 }
 0x4a7   :  { %794 = vmatprep.mubr.msk.bf16.mxu0 %vm845_vm1, %v844_v1  ;;  %793 = vmatpush3.bf16.msra.mxu0 %v817_v8 }
 0x566   :  { %v520_v10 = vpop.f32.mrf.mxu0 }
 0x567   :  { %v521_v11 = vadd.f32 %v688_v9, %v520_v10 }
 0x568   :  { %v782_v12 = vpop.f32.mrf.mxu0 }
 0x569   :  { %v526_v13 = vpack.c.bf16 %v521_v11, %v521_v11 }
 0x56a   :  { %v523_v14 = vpop.f32.mrf.mxu0 }
 0x56b   :  { %789 = vmatmul.mubr.msk.bf16.vlgmr.msra.gmra.mxu1 %vm231_vm4, %v526_v13 }
 0x56c   :  { %v783_v1 = vpop.f32.mrf.mxu0 }
 0x62b   :  { %v587_v16 = vpop.f32.mrf.mxu1 }
 0x62c   :  { %v588_v17 = vadd.f32 %v692_v15, %v587_v16 }
 0x62d   :  { %v790_v18 = vpop.f32.mrf.mxu1 }
 0x62e   :  { %v593_v19 = vmax.f32 %v588_v17, 0.0 }
 0x62f   :  { %v590_v20 = vpop.f32.mrf.mxu1 }
 0x630   :  { %v594_v21 = vpack.c.bf16 %v593_v19, %v593_v19 }
 0x631   :  { %v791_v22 = vpop.f32.mrf.mxu1 }
 0x632   :  { %795 = vmatmul.mubr.msk.bf16.vlgmr.msra.gmra.mxu0 %vm610_vm7, %v594_v21 }
 0x6f2   :  { %v648_v24 = vpop.f32.mrf.mxu0 }
 0x6f3   :  { %v649_v25 = vadd.f32 %v696_v23, %v648_v24 }
 0x6f4   :  { %v796_v26 = vpop.f32.mrf.mxu0 }
 0x6f5   :  { %654 = vst [vmem:[#allocation2] sm:$0xff] %v649_v25 }
 0x6f6   :  { %v651_v27 = vpop.f32.mrf.mxu0 }
 0x6f7   :  { %833 = shalt.err (!%p830_p4)
}
 0x6f8   :  { %664 = dma.vmem_to_hbm [thread:$0]  %s662_s27, 128, %s1069_s16, [#allocation3]   ;;  %v797_v28 = vpop.f32.mrf.mxu0 }
 0x6f9   :  { %842 = dma.done.wait [#allocation3], 128  }
 0x6fa   :  { %843 = vsyncadd [#allocation3], 4294967168 }
 0x6fb   :  { %668 = vsyncpa [#allocation3], 1 }

</bundles_post_ra>
